<compile_context>
chip_gen: v6e
topology: v6e:2x2x1
jax: 0.10.0
libtpu: 0.0.40
codegen_flags: <defaults>
</compile_context>

<pallas_src>
import functools

import jax
import jax.numpy as jnp
from jax.experimental import pallas as pl
from jax.experimental.pallas import tpu as pltpu


def _round_up(x, m):
    return ((x + m - 1) // m) * m


def _mlp_kernel(x_ref,
                ln1w_ref, ln1b_ref, w1_ref, b1_ref,
                ln2w_ref, ln2b_ref, w2_ref, b2_ref,
                ln3w_ref, ln3b_ref, w3_ref, b3_ref,
                out_ref):
    """One (tile_rows, in_features) slab through the whole 3-block MLP."""
    f32 = jnp.float32
    eps = f32(1e-5)  # PyTorch nn.LayerNorm default eps

    def layernorm(h, w, b):
        # One-pass statistics (single sweep over h): mu = s1/n, var = s2/n - mu^2
        inv_n = f32(1.0 / h.shape[-1])
        s1 = jnp.sum(h, axis=-1, keepdims=True)
        s2 = jnp.sum(h * h, axis=-1, keepdims=True)
        mu = s1 * inv_n
        var = jnp.maximum(s2 * inv_n - mu * mu, 0.0)  # biased var (torch)
        return (h - mu) * jax.lax.rsqrt(var + eps) * w + b

    # Hoisted single reads of the grid-invariant parameters.
    ln1w = ln1w_ref[...].astype(f32); ln1b = ln1b_ref[...].astype(f32)
    ln2w = ln2w_ref[...].astype(f32); ln2b = ln2b_ref[...].astype(f32)
    ln3w = ln3w_ref[...].astype(f32); ln3b = ln3b_ref[...].astype(f32)
    w1 = w1_ref[...]; b1 = b1_ref[...].astype(f32)
    w2 = w2_ref[...]; b2 = b2_ref[...].astype(f32)
    w3 = w3_ref[...]; b3 = b3_ref[...].astype(f32)
    mm_dtype = w1.dtype  # bf16 fast path or f32; accumulation is always f32

    x = x_ref[...].astype(f32)

    # block 1: LN -> Linear -> ReLU
    h = layernorm(x, ln1w, ln1b)
    h = jnp.dot(h.astype(mm_dtype), w1, preferred_element_type=f32) + b1
    h = jnp.maximum(h, 0.0)

    # block 2: LN -> Linear -> ReLU
    h = layernorm(h, ln2w, ln2b)
    h = jnp.dot(h.astype(mm_dtype), w2, preferred_element_type=f32) + b2
    h = jnp.maximum(h, 0.0)

    # block 3: LN -> Linear (no activation)
    h = layernorm(h, ln3w, ln3b)
    out = jnp.dot(h.astype(mm_dtype), w3, preferred_element_type=f32) + b3

    # num_components << 128, so this is a masked (partial-lane) store; at
    # tile_rows >= 512 it is ~1-2% of the step, so an in-kernel
    # (R, C) -> (R/32, 32*C) lane-dense repack (XLU relayout) is not worth it.
    out_ref[...] = out.astype(out_ref.dtype)


def _choose_tile_rows(n_rows, in_f, hidden, n_comp, x_bytes, w_bytes,
                      vmem_budget_bytes=24 * 1024 * 1024):
    """Pick the row tile: as large as the VMEM budget allows (cap 1024)."""
    h2 = hidden // 2
    # Per-row VMEM: double-buffered x / out tiles + f32 live intermediates.
    per_row = 2 * in_f * x_bytes + 2 * n_comp * 4
    per_row += 4 * (in_f + hidden + h2 + 2 * n_comp)
    weight_bytes = w_bytes * (in_f * hidden + hidden * h2 + h2 * n_comp)
    budget = max(vmem_budget_bytes - weight_bytes, 1 << 20)

    tile = int(budget // max(per_row, 1))
    tile = min(tile, 1024)                       # diminishing returns past ~1K rows
    tile = max(8, (tile // 8) * 8)               # multiple of 8 sublanes
    tile = min(tile, _round_up(n_rows, 8))       # never bigger than the problem

    # Keep >= 2 grid steps when there is enough work (v7x: 2 TensorCores).
    if n_rows >= 512 and _round_up(n_rows, tile) // tile < 2:
        tile = max(256, _round_up((n_rows + 1) // 2, 8))
    return tile


@functools.partial(jax.jit, static_argnames=("compute_dtype",))
def principal_components_predictor(x, params, compute_dtype=jnp.float32):
    """x: (batch, seq, in_features) -> (batch, seq, num_components)."""
    B, S, F = x.shape
    N = B * S
    H = params["w1"].shape[1]
    H2 = params["w2"].shape[1]
    C = params["w3"].shape[1]

    # Linear weights on the MXU fast path (bf16 halves weight + LN-output
    # traffic); LN params and biases stay f32.
    w1 = params["w1"].astype(compute_dtype)
    w2 = params["w2"].astype(compute_dtype)
    w3 = params["w3"].astype(compute_dtype)

    x_bytes = jnp.dtype(x.dtype).itemsize
    w_bytes = jnp.dtype(compute_dtype).itemsize
    tile_rows = _choose_tile_rows(N, F, H, C, x_bytes, w_bytes)

    # Pad rows so any batch*seq works with the perf-optimal tile.
    N_pad = _round_up(N, tile_rows)
    xr = x.reshape(N, F)
    if N_pad != N:
        xr = jnp.pad(xr, ((0, N_pad - N), (0, 0)))

    param_list = [params["ln1_w"], params["ln1_b"], w1, params["b1"],
                  params["ln2_w"], params["ln2_b"], w2, params["b2"],
                  params["ln3_w"], params["ln3_b"], w3, params["b3"]]

    # Grid-invariant params: whole-array VMEM residency (no double buffering).
    vmem_full = pl.BlockSpec(memory_space=pltpu.MemorySpace.VMEM)
    in_specs = [pl.BlockSpec((tile_rows, F), lambda i: (i, 0))] + [vmem_full] * 12
    out_specs = pl.BlockSpec((tile_rows, C), lambda i: (i, 0))

    # Explicit scoped-VMEM limit (v7x has only 64 MiB physical).
    est = (2 * tile_rows * F * x_bytes          # double-buffered x tiles
           + 2 * tile_rows * C * 4              # double-buffered out tiles
           + 4 * tile_rows * (F + H + H2 + C)   # f32 intermediates
           + w_bytes * (F * H + H * H2 + H2 * C)
           + 4 * (2 * F + 2 * H + 2 * H2 + H + H2 + C))
    vmem_limit = int(min(64 * 1024 * 1024, max(32 * 1024 * 1024, 2 * est)))

    out = pl.pallas_call(
        _mlp_kernel,
        out_shape=jax.ShapeDtypeStruct((N_pad, C), jnp.float32),
        grid=(N_pad // tile_rows,),
        in_specs=in_specs,
        out_specs=out_specs,
        compiler_params=pltpu.CompilerParams(
            dimension_semantics=("parallel",),
            vmem_limit_bytes=vmem_limit),
    )(xr, *param_list)

    return out[:N].reshape(B, S, C)


def init_params(key, in_features, num_components, hidden_features=256,
                dtype=jnp.float32):
    """Deterministic synthetic parameters (same shapes as the torch module)."""
    h2 = hidden_features // 2
    ks = jax.random.split(key, 6)

    def lin(kw, kb, fan_in, fan_out):
        bound = 1.0 / jnp.sqrt(jnp.float32(fan_in))
        w = jax.random.uniform(kw, (fan_in, fan_out), dtype, -bound, bound)  # (in, out)
        b = jax.random.uniform(kb, (1, fan_out), dtype, -bound, bound)
        return w, b

    w1, b1 = lin(ks[0], ks[1], in_features, hidden_features)
    w2, b2 = lin(ks[2], ks[3], hidden_features, h2)
    w3, b3 = lin(ks[4], ks[5], h2, num_components)

    return dict(
        ln1_w=jnp.ones((1, in_features), dtype), ln1_b=jnp.zeros((1, in_features), dtype),
        w1=w1, b1=b1,
        ln2_w=jnp.ones((1, hidden_features), dtype), ln2_b=jnp.zeros((1, hidden_features), dtype),
        w2=w2, b2=b2,
        ln3_w=jnp.ones((1, h2), dtype), ln3_b=jnp.zeros((1, h2), dtype),
        w3=w3, b3=b3,
    )


def _reference_forward(x, params, matmul_dtype=jnp.float32):
    """Pure-JAX reference mirroring the PyTorch forward (two-pass LN)."""
    eps = 1e-5
    f32 = jnp.float32

    def ln(h, w, b):
        mu = jnp.mean(h, axis=-1, keepdims=True)
        var = jnp.mean((h - mu) ** 2, axis=-1, keepdims=True)
        return (h - mu) / jnp.sqrt(var + eps) * w + b

    h = x.astype(f32)
    h = ln(h, params["ln1_w"][0], params["ln1_b"][0])
    h = jnp.maximum(jnp.dot(h.astype(matmul_dtype), params["w1"].astype(matmul_dtype),
                            preferred_element_type=f32) + params["b1"][0], 0.0)
    h = ln(h, params["ln2_w"][0], params["ln2_b"][0])
    h = jnp.maximum(jnp.dot(h.astype(matmul_dtype), params["w2"].astype(matmul_dtype),
                            preferred_element_type=f32) + params["b2"][0], 0.0)
    h = ln(h, params["ln3_w"][0], params["ln3_b"][0])
    return jnp.dot(h.astype(matmul_dtype), params["w3"].astype(matmul_dtype),
                   preferred_element_type=f32) + params["b3"][0]


if __name__ == "__main__":
    key = jax.random.PRNGKey(0)
    k_x, k_p, k_x2 = jax.random.split(key, 3)

    batch, seq = 2, 8
    in_features, hidden_features, num_components = 16, 32, 4

    x = jax.random.normal(k_x, (batch, seq, in_features), dtype=jnp.float32)
    params = init_params(k_p, in_features, num_components, hidden_features)

    # 1) f32 path — exact check against the torch-equivalent reference.
    out = jax.block_until_ready(principal_components_predictor(x, params))
    ref = _reference_forward(x, params)
    assert out.shape == (batch, seq, num_components), out.shape
    assert jnp.allclose(out, ref, atol=1e-4, rtol=1e-4), (
        float(jnp.max(jnp.abs(out - ref))))

    # 2) bf16 matmul fast path (f32 LN stats + f32 accumulation).
    x_bf = x.astype(jnp.bfloat16)
    out_bf = jax.block_until_ready(
        principal_components_predictor(x_bf, params, compute_dtype=jnp.bfloat16))
    ref_bf = _reference_forward(x_bf, params, matmul_dtype=jnp.bfloat16)
    assert jnp.allclose(out_bf, ref_bf, atol=2e-3, rtol=2e-3), (
        float(jnp.max(jnp.abs(out_bf - ref_bf))))

    # 3) Ragged row count — exercises the zero-padded tail path.
    x3 = jax.random.normal(k_x2, (3, 7, in_features), dtype=jnp.float32)
    out3 = jax.block_until_ready(principal_components_predictor(x3, params))
    ref3 = _reference_forward(x3, params)
    assert jnp.allclose(out3, ref3, atol=1e-4, rtol=1e-4), (
        float(jnp.max(jnp.abs(out3 - ref3))))

    print("KERNEL_OK")
</pallas_src>

<mosaic_0001>
module attributes {stable_mosaic.version = 11 : i64} {
  func.func @_mlp_kernel(%arg0: i32, %arg1: memref<16x16xf32, #tpu.memory_space<vmem>>, %arg2: memref<1x16xf32, #tpu.memory_space<vmem>>, %arg3: memref<1x16xf32, #tpu.memory_space<vmem>>, %arg4: memref<16x32xf32, #tpu.memory_space<vmem>>, %arg5: memref<1x32xf32, #tpu.memory_space<vmem>>, %arg6: memref<1x32xf32, #tpu.memory_space<vmem>>, %arg7: memref<1x32xf32, #tpu.memory_space<vmem>>, %arg8: memref<32x16xf32, #tpu.memory_space<vmem>>, %arg9: memref<1x16xf32, #tpu.memory_space<vmem>>, %arg10: memref<1x16xf32, #tpu.memory_space<vmem>>, %arg11: memref<1x16xf32, #tpu.memory_space<vmem>>, %arg12: memref<16x4xf32, #tpu.memory_space<vmem>>, %arg13: memref<1x4xf32, #tpu.memory_space<vmem>>, %arg14: memref<16x4xf32, #tpu.memory_space<vmem>>) attributes {dimension_semantics = [#tpu.dimension_semantics<parallel>], iteration_bounds = array<i64: 1>, scalar_prefetch = 0 : i64, scratch_operands = 0 : i64, tpu.core_type = #tpu.core_type<tc>, window_params = [{transform_indices = @transform_0, window_bounds = array<i64: 16, 16>}, {pipeline_mode = #tpu.pipeline_mode<synchronous>, transform_indices = @transform_1, window_bounds = array<i64: 1, 16>}, {pipeline_mode = #tpu.pipeline_mode<synchronous>, transform_indices = @transform_2, window_bounds = array<i64: 1, 16>}, {pipeline_mode = #tpu.pipeline_mode<synchronous>, transform_indices = @transform_3, window_bounds = array<i64: 16, 32>}, {pipeline_mode = #tpu.pipeline_mode<synchronous>, transform_indices = @transform_4, window_bounds = array<i64: 1, 32>}, {pipeline_mode = #tpu.pipeline_mode<synchronous>, transform_indices = @transform_5, window_bounds = array<i64: 1, 32>}, {pipeline_mode = #tpu.pipeline_mode<synchronous>, transform_indices = @transform_6, window_bounds = array<i64: 1, 32>}, {pipeline_mode = #tpu.pipeline_mode<synchronous>, transform_indices = @transform_7, window_bounds = array<i64: 32, 16>}, {pipeline_mode = #tpu.pipeline_mode<synchronous>, transform_indices = @transform_8, window_bounds = array<i64: 1, 16>}, {pipeline_mode = #tpu.pipeline_mode<synchronous>, transform_indices = @transform_9, window_bounds = array<i64: 1, 16>}, {pipeline_mode = #tpu.pipeline_mode<synchronous>, transform_indices = @transform_10, window_bounds = array<i64: 1, 16>}, {pipeline_mode = #tpu.pipeline_mode<synchronous>, transform_indices = @transform_11, window_bounds = array<i64: 16, 4>}, {pipeline_mode = #tpu.pipeline_mode<synchronous>, transform_indices = @transform_12, window_bounds = array<i64: 1, 4>}, {transform_indices = @transform_13, window_bounds = array<i64: 16, 4>}]} {
    %c0 = arith.constant 0 : index
    %c0_0 = arith.constant 0 : index
    %0 = vector.load %arg2[%c0, %c0_0] : memref<1x16xf32, #tpu.memory_space<vmem>>, vector<1x16xf32>
    %c0_1 = arith.constant 0 : index
    %c0_2 = arith.constant 0 : index
    %1 = vector.load %arg3[%c0_1, %c0_2] : memref<1x16xf32, #tpu.memory_space<vmem>>, vector<1x16xf32>
    %c0_3 = arith.constant 0 : index
    %c0_4 = arith.constant 0 : index
    %2 = vector.load %arg6[%c0_3, %c0_4] : memref<1x32xf32, #tpu.memory_space<vmem>>, vector<1x32xf32>
    %c0_5 = arith.constant 0 : index
    %c0_6 = arith.constant 0 : index
    %3 = vector.load %arg7[%c0_5, %c0_6] : memref<1x32xf32, #tpu.memory_space<vmem>>, vector<1x32xf32>
    %c0_7 = arith.constant 0 : index
    %c0_8 = arith.constant 0 : index
    %4 = vector.load %arg10[%c0_7, %c0_8] : memref<1x16xf32, #tpu.memory_space<vmem>>, vector<1x16xf32>
    %c0_9 = arith.constant 0 : index
    %c0_10 = arith.constant 0 : index
    %5 = vector.load %arg11[%c0_9, %c0_10] : memref<1x16xf32, #tpu.memory_space<vmem>>, vector<1x16xf32>
    %c0_11 = arith.constant 0 : index
    %c0_12 = arith.constant 0 : index
    %6 = vector.load %arg4[%c0_11, %c0_12] : memref<16x32xf32, #tpu.memory_space<vmem>>, vector<16x32xf32>
    %c0_13 = arith.constant 0 : index
    %c0_14 = arith.constant 0 : index
    %7 = vector.load %arg5[%c0_13, %c0_14] : memref<1x32xf32, #tpu.memory_space<vmem>>, vector<1x32xf32>
    %c0_15 = arith.constant 0 : index
    %c0_16 = arith.constant 0 : index
    %8 = vector.load %arg8[%c0_15, %c0_16] : memref<32x16xf32, #tpu.memory_space<vmem>>, vector<32x16xf32>
    %c0_17 = arith.constant 0 : index
    %c0_18 = arith.constant 0 : index
    %9 = vector.load %arg9[%c0_17, %c0_18] : memref<1x16xf32, #tpu.memory_space<vmem>>, vector<1x16xf32>
    %c0_19 = arith.constant 0 : index
    %c0_20 = arith.constant 0 : index
    %10 = vector.load %arg12[%c0_19, %c0_20] : memref<16x4xf32, #tpu.memory_space<vmem>>, vector<16x4xf32>
    %c0_21 = arith.constant 0 : index
    %c0_22 = arith.constant 0 : index
    %11 = vector.load %arg13[%c0_21, %c0_22] : memref<1x4xf32, #tpu.memory_space<vmem>>, vector<1x4xf32>
    %c0_23 = arith.constant 0 : index
    %c0_24 = arith.constant 0 : index
    %12 = vector.load %arg1[%c0_23, %c0_24] : memref<16x16xf32, #tpu.memory_space<vmem>>, vector<16x16xf32>
    %cst = arith.constant dense<0.000000e+00> : vector<16xf32>
    %13 = vector.multi_reduction <add>, %12, %cst [1] : vector<16x16xf32> to vector<16xf32>
    %14 = vector.shape_cast %13 : vector<16xf32> to vector<16x1xf32>
    %15 = arith.mulf %12, %12 : vector<16x16xf32>
    %cst_25 = arith.constant dense<0.000000e+00> : vector<16xf32>
    %16 = vector.multi_reduction <add>, %15, %cst_25 [1] : vector<16x16xf32> to vector<16xf32>
    %17 = vector.shape_cast %16 : vector<16xf32> to vector<16x1xf32>
    %cst_26 = arith.constant 6.250000e-02 : f32
    %18 = vector.broadcast %cst_26 : f32 to vector<16x1xf32>
    %19 = arith.mulf %14, %18 : vector<16x1xf32>
    %cst_27 = arith.constant 6.250000e-02 : f32
    %20 = vector.broadcast %cst_27 : f32 to vector<16x1xf32>
    %21 = arith.mulf %17, %20 : vector<16x1xf32>
    %22 = arith.mulf %19, %19 : vector<16x1xf32>
    %23 = arith.subf %21, %22 : vector<16x1xf32>
    %cst_28 = arith.constant 0.000000e+00 : f32
    %24 = vector.broadcast %cst_28 : f32 to vector<16x1xf32>
    %25 = arith.maximumf %23, %24 : vector<16x1xf32>
    %26 = vector.broadcast %19 : vector<16x1xf32> to vector<16x16xf32>
    %27 = arith.subf %12, %26 : vector<16x16xf32>
    %cst_29 = arith.constant 9.99999974E-6 : f32
    %28 = vector.broadcast %cst_29 : f32 to vector<16x1xf32>
    %29 = arith.addf %25, %28 : vector<16x1xf32>
    %30 = math.rsqrt %29 : vector<16x1xf32>
    %31 = vector.broadcast %30 : vector<16x1xf32> to vector<16x16xf32>
    %32 = arith.mulf %27, %31 : vector<16x16xf32>
    %33 = vector.broadcast %0 : vector<1x16xf32> to vector<16x16xf32>
    %34 = arith.mulf %32, %33 : vector<16x16xf32>
    %35 = vector.broadcast %1 : vector<1x16xf32> to vector<16x16xf32>
    %36 = arith.addf %34, %35 : vector<16x16xf32>
    %cst_30 = arith.constant dense<0.000000e+00> : vector<16x32xf32>
    %37 = tpu.matmul %36, %6, %cst_30 {dimension_numbers = #tpu.dot_dimension_numbers<[1], [0], [0], [1], [0, 0, 1, 1], [], []>} : vector<16x16xf32>, vector<16x32xf32>, vector<16x32xf32> -> vector<16x32xf32>
    %38 = vector.broadcast %7 : vector<1x32xf32> to vector<16x32xf32>
    %39 = arith.addf %37, %38 : vector<16x32xf32>
    %cst_31 = arith.constant 0.000000e+00 : f32
    %40 = vector.broadcast %cst_31 : f32 to vector<16x32xf32>
    %41 = arith.maximumf %39, %40 : vector<16x32xf32>
    %cst_32 = arith.constant dense<0.000000e+00> : vector<16xf32>
    %42 = vector.multi_reduction <add>, %41, %cst_32 [1] : vector<16x32xf32> to vector<16xf32>
    %43 = vector.shape_cast %42 : vector<16xf32> to vector<16x1xf32>
    %44 = arith.mulf %41, %41 : vector<16x32xf32>
    %cst_33 = arith.constant dense<0.000000e+00> : vector<16xf32>
    %45 = vector.multi_reduction <add>, %44, %cst_33 [1] : vector<16x32xf32> to vector<16xf32>
    %46 = vector.shape_cast %45 : vector<16xf32> to vector<16x1xf32>
    %cst_34 = arith.constant 3.125000e-02 : f32
    %47 = vector.broadcast %cst_34 : f32 to vector<16x1xf32>
    %48 = arith.mulf %43, %47 : vector<16x1xf32>
    %cst_35 = arith.constant 3.125000e-02 : f32
    %49 = vector.broadcast %cst_35 : f32 to vector<16x1xf32>
    %50 = arith.mulf %46, %49 : vector<16x1xf32>
    %51 = arith.mulf %48, %48 : vector<16x1xf32>
    %52 = arith.subf %50, %51 : vector<16x1xf32>
    %cst_36 = arith.constant 0.000000e+00 : f32
    %53 = vector.broadcast %cst_36 : f32 to vector<16x1xf32>
    %54 = arith.maximumf %52, %53 : vector<16x1xf32>
    %55 = vector.broadcast %48 : vector<16x1xf32> to vector<16x32xf32>
    %56 = arith.subf %41, %55 : vector<16x32xf32>
    %cst_37 = arith.constant 9.99999974E-6 : f32
    %57 = vector.broadcast %cst_37 : f32 to vector<16x1xf32>
    %58 = arith.addf %54, %57 : vector<16x1xf32>
    %59 = math.rsqrt %58 : vector<16x1xf32>
    %60 = vector.broadcast %59 : vector<16x1xf32> to vector<16x32xf32>
    %61 = arith.mulf %56, %60 : vector<16x32xf32>
    %62 = vector.broadcast %2 : vector<1x32xf32> to vector<16x32xf32>
    %63 = arith.mulf %61, %62 : vector<16x32xf32>
    %64 = vector.broadcast %3 : vector<1x32xf32> to vector<16x32xf32>
    %65 = arith.addf %63, %64 : vector<16x32xf32>
    %cst_38 = arith.constant dense<0.000000e+00> : vector<16x16xf32>
    %66 = tpu.matmul %65, %8, %cst_38 {dimension_numbers = #tpu.dot_dimension_numbers<[1], [0], [0], [1], [0, 0, 1, 1], [], []>} : vector<16x32xf32>, vector<32x16xf32>, vector<16x16xf32> -> vector<16x16xf32>
    %67 = vector.broadcast %9 : vector<1x16xf32> to vector<16x16xf32>
    %68 = arith.addf %66, %67 : vector<16x16xf32>
    %cst_39 = arith.constant 0.000000e+00 : f32
    %69 = vector.broadcast %cst_39 : f32 to vector<16x16xf32>
    %70 = arith.maximumf %68, %69 : vector<16x16xf32>
    %cst_40 = arith.constant dense<0.000000e+00> : vector<16xf32>
    %71 = vector.multi_reduction <add>, %70, %cst_40 [1] : vector<16x16xf32> to vector<16xf32>
    %72 = vector.shape_cast %71 : vector<16xf32> to vector<16x1xf32>
    %73 = arith.mulf %70, %70 : vector<16x16xf32>
    %cst_41 = arith.constant dense<0.000000e+00> : vector<16xf32>
    %74 = vector.multi_reduction <add>, %73, %cst_41 [1] : vector<16x16xf32> to vector<16xf32>
    %75 = vector.shape_cast %74 : vector<16xf32> to vector<16x1xf32>
    %cst_42 = arith.constant 6.250000e-02 : f32
    %76 = vector.broadcast %cst_42 : f32 to vector<16x1xf32>
    %77 = arith.mulf %72, %76 : vector<16x1xf32>
    %cst_43 = arith.constant 6.250000e-02 : f32
    %78 = vector.broadcast %cst_43 : f32 to vector<16x1xf32>
    %79 = arith.mulf %75, %78 : vector<16x1xf32>
    %80 = arith.mulf %77, %77 : vector<16x1xf32>
    %81 = arith.subf %79, %80 : vector<16x1xf32>
    %cst_44 = arith.constant 0.000000e+00 : f32
    %82 = vector.broadcast %cst_44 : f32 to vector<16x1xf32>
    %83 = arith.maximumf %81, %82 : vector<16x1xf32>
    %84 = vector.broadcast %77 : vector<16x1xf32> to vector<16x16xf32>
    %85 = arith.subf %70, %84 : vector<16x16xf32>
    %cst_45 = arith.constant 9.99999974E-6 : f32
    %86 = vector.broadcast %cst_45 : f32 to vector<16x1xf32>
    %87 = arith.addf %83, %86 : vector<16x1xf32>
    %88 = math.rsqrt %87 : vector<16x1xf32>
    %89 = vector.broadcast %88 : vector<16x1xf32> to vector<16x16xf32>
    %90 = arith.mulf %85, %89 : vector<16x16xf32>
    %91 = vector.broadcast %4 : vector<1x16xf32> to vector<16x16xf32>
    %92 = arith.mulf %90, %91 : vector<16x16xf32>
    %93 = vector.broadcast %5 : vector<1x16xf32> to vector<16x16xf32>
    %94 = arith.addf %92, %93 : vector<16x16xf32>
    %cst_46 = arith.constant dense<0.000000e+00> : vector<16x4xf32>
    %95 = tpu.matmul %94, %10, %cst_46 {dimension_numbers = #tpu.dot_dimension_numbers<[1], [0], [0], [1], [0, 0, 1, 1], [], []>} : vector<16x16xf32>, vector<16x4xf32>, vector<16x4xf32> -> vector<16x4xf32>
    %96 = vector.broadcast %11 : vector<1x4xf32> to vector<16x4xf32>
    %97 = arith.addf %95, %96 : vector<16x4xf32>
    %c0_47 = arith.constant 0 : index
    %c0_48 = arith.constant 0 : index
    %98 = vector.load %arg14[%c0_47, %c0_48] : memref<16x4xf32, #tpu.memory_space<vmem>>, vector<16x4xf32>
    tpu.vector_store %arg14[%c0_47, %c0_48], %97 {strides = array<i32>} : memref<16x4xf32, #tpu.memory_space<vmem>>, vector<16x4xf32>,
    return
  }
  func.func @transform_0(%arg0: i32) -> (i32, i32) {
    %c0_i32 = arith.constant 0 : i32
    %c0_i32_0 = arith.constant 0 : i32
    return %arg0, %c0_i32 : i32, i32
  }
  func.func @transform_1(%arg0: i32) -> (i32, i32) {
    %c0_i32 = arith.constant 0 : i32
    %c0_i32_0 = arith.constant 0 : i32
    %c0_i32_1 = arith.constant 0 : i32
    return %c0_i32, %c0_i32_0 : i32, i32
  }
  func.func @transform_2(%arg0: i32) -> (i32, i32) {
    %c0_i32 = arith.constant 0 : i32
    %c0_i32_0 = arith.constant 0 : i32
    %c0_i32_1 = arith.constant 0 : i32
    return %c0_i32, %c0_i32_0 : i32, i32
  }
  func.func @transform_3(%arg0: i32) -> (i32, i32) {
    %c0_i32 = arith.constant 0 : i32
    %c0_i32_0 = arith.constant 0 : i32
    %c0_i32_1 = arith.constant 0 : i32
    return %c0_i32, %c0_i32_0 : i32, i32
  }
  func.func @transform_4(%arg0: i32) -> (i32, i32) {
    %c0_i32 = arith.constant 0 : i32
    %c0_i32_0 = arith.constant 0 : i32
    %c0_i32_1 = arith.constant 0 : i32
    return %c0_i32, %c0_i32_0 : i32, i32
  }
  func.func @transform_5(%arg0: i32) -> (i32, i32) {
    %c0_i32 = arith.constant 0 : i32
    %c0_i32_0 = arith.constant 0 : i32
    %c0_i32_1 = arith.constant 0 : i32
    return %c0_i32, %c0_i32_0 : i32, i32
  }
  func.func @transform_6(%arg0: i32) -> (i32, i32) {
    %c0_i32 = arith.constant 0 : i32
    %c0_i32_0 = arith.constant 0 : i32
    %c0_i32_1 = arith.constant 0 : i32
    return %c0_i32, %c0_i32_0 : i32, i32
  }
  func.func @transform_7(%arg0: i32) -> (i32, i32) {
    %c0_i32 = arith.constant 0 : i32
    %c0_i32_0 = arith.constant 0 : i32
    %c0_i32_1 = arith.constant 0 : i32
    return %c0_i32, %c0_i32_0 : i32, i32
  }
  func.func @transform_8(%arg0: i32) -> (i32, i32) {
    %c0_i32 = arith.constant 0 : i32
    %c0_i32_0 = arith.constant 0 : i32
    %c0_i32_1 = arith.constant 0 : i32
    return %c0_i32, %c0_i32_0 : i32, i32
  }
  func.func @transform_9(%arg0: i32) -> (i32, i32) {
    %c0_i32 = arith.constant 0 : i32
    %c0_i32_0 = arith.constant 0 : i32
    %c0_i32_1 = arith.constant 0 : i32
    return %c0_i32, %c0_i32_0 : i32, i32
  }
  func.func @transform_10(%arg0: i32) -> (i32, i32) {
    %c0_i32 = arith.constant 0 : i32
    %c0_i32_0 = arith.constant 0 : i32
    %c0_i32_1 = arith.constant 0 : i32
    return %c0_i32, %c0_i32_0 : i32, i32
  }
  func.func @transform_11(%arg0: i32) -> (i32, i32) {
    %c0_i32 = arith.constant 0 : i32
    %c0_i32_0 = arith.constant 0 : i32
    %c0_i32_1 = arith.constant 0 : i32
    return %c0_i32, %c0_i32_0 : i32, i32
  }
  func.func @transform_12(%arg0: i32) -> (i32, i32) {
    %c0_i32 = arith.constant 0 : i32
    %c0_i32_0 = arith.constant 0 : i32
    %c0_i32_1 = arith.constant 0 : i32
    return %c0_i32, %c0_i32_0 : i32, i32
  }
  func.func @transform_13(%arg0: i32) -> (i32, i32) {
    %c0_i32 = arith.constant 0 : i32
    %c0_i32_0 = arith.constant 0 : i32
    return %arg0, %c0_i32 : i32, i32
  }
}

</mosaic_0001>

<bundles_post_ra>
// kernel: principal_components_predictor.1
= control target key start
LH: loop header
LB: loop body
LE: loop exit
PB: predicated region body
PF: predicated region fallthrough
CT: control target
= control target key end

     0   :  { %vm63_vm0 = vcmask 130048   ;;  %vm201_vm1 = vcmask 261120   ;;  %vm474_vm2 = vcmask 31744   ;;  %s698_s0 = inlined_call_operand.vmem [shape: f32[16,16], index: 0, kind: input, shape index: {}]   ;;  %s699_s3 = inlined_call_operand.vmem [shape: f32[16,32], index: 3, kind: input, shape index: {}]   ;;  %s700_s1 = inlined_call_operand.vmem [shape: f32[1,16], index: 1, kind: input, shape index: {}]   ;;  %s701_s2 = inlined_call_operand.vmem [shape: f32[1,16], index: 2, kind: input, shape index: {}]   ;;  %s702_s4 = inlined_call_operand.vmem [shape: f32[1,32], index: 4, kind: input, shape index: {}]   ;;  %s703_s7 = inlined_call_operand.vmem [shape: f32[32,16], index: 7, kind: input, shape index: {}]   ;;  %s704_s5 = inlined_call_operand.vmem [shape: f32[1,32], index: 5, kind: input, shape index: {}]   ;;  %s705_s6 = inlined_call_operand.vmem [shape: f32[1,32], index: 6, kind: input, shape index: {}]   ;;  %s706_s8 = inlined_call_operand.vmem [shape: f32[1,16], index: 8, kind: input, shape index: {}]   ;;  %s707_s11 = inlined_call_operand.vmem [shape: f32[16,4], index: 11, kind: input, shape index: {}]   ;;  %s708_s9 = inlined_call_operand.vmem [shape: f32[1,16], index: 9, kind: input, shape index: {}]   ;;  %s709_s10 = inlined_call_operand.vmem [shape: f32[1,16], index: 10, kind: input, shape index: {}]   ;;  %s710_s12 = inlined_call_operand.vmem [shape: f32[1,4], index: 12, kind: input, shape index: {}]   ;;  %s711_s13 = inlined_call_operand.vmem [shape: f32[16,4], index: 13, kind: output, shape index: {}]  }
   0x1   :  { %v61_v0 = vld [vmem:[%s698_s0] sm:$0xff]  ;;  %v62_v1 = vld [vmem:[%s698_s0 + $0x8] sm:$0xff]  ;;  %v56_v51 = vld [vmem:[%s703_s7 + $0x18] sm:$0xff] }
   0x2   :  { %v64_v2 = vsel %vm63_vm0, %v61_v0, 0.0  ;;  %v70_v3 = vmul.f32 %v61_v0, %v61_v0  ;;  %v71_v4 = vmul.f32 %v62_v1, %v62_v1  ;;  %v67_v6 = vsel %vm63_vm0, %v62_v1, 0.0  ;;  %v51_v8 = vld [vmem:[%s699_s3 + $0x8] sm:$0xff]  ;;  %v50_v9 = vld [vmem:[%s699_s3] sm:$0xff]  ;;  %v55_v52 = vld [vmem:[%s703_s7 + $0x10] sm:$0xff]  ;;  %517 = vmatprep.subr.mxu1 %v56_v51 }
   0x3   :  { %65 = vadd.xlane.f32.xlu0 %v64_v2  ;;  %510 = vmatprep.subr.mxu0 %v51_v8  ;;  %v481_v28 = vld [vmem:[%s700_s1] ss:$0 sm:$0xff]  ;;  %v54_v53 = vld [vmem:[%s703_s7 + $0x8] sm:$0xff] }
   0x4   :  { %v72_v5 = vsel %vm63_vm0, %v70_v3, 0.0  ;;  %v75_v7 = vsel %vm63_vm0, %v71_v4, 0.0  ;;  %511 = vmatpush3.msra.mxu0 %v51_v8  ;;  %v482_v30 = vld [vmem:[%s701_s2] ss:$0 sm:$0xff]  ;;  %518 = vmatpush3.msra.mxu1 %v56_v51 }
   0x5   :  { %73 = vadd.xlane.f32.xlu1 %v72_v5  ;;  %512 = vmatprep.subr.mxu0 %v50_v9  ;;  %v483_v38 = vld [vmem:[%s702_s4] ss:$0 sm:$0xff] }
   0x6   :  { %513 = vmatpush3.msra.mxu0 %v50_v9  ;;  %519 = vmatprep.subr.mxu1 %v55_v52  ;;  %v53_v54 = vld [vmem:[%s703_s7] sm:$0xff] }
   0x7   :  { %68 = vadd.xlane.f32.xlu0 %v67_v6  ;;  %520 = vmatpush3.msra.mxu1 %v55_v52 }
   0x8   :  { %521 = vmatprep.subr.mxu1 %v54_v53 }
   0x9   :  { %76 = vadd.xlane.f32.xlu1 %v75_v7  ;;  %522 = vmatpush3.msra.mxu1 %v54_v53  ;;  %v491_v53 = vld [vmem:[%s708_s9] ss:$0 sm:$0xff] }
   0xa   :  { %523 = vmatprep.subr.mxu1 %v53_v54 }
   0xb   :  { %524 = vmatpush3.msra.mxu1 %v53_v54 }
  0x8c   :  { %v66_v10 = vpop.xlane.xlu0 %65 }
  0x8d   :  { %v78_v11 = vmul.f32 0.0625, %v66_v10  ;;  %v486_v10 = vld [vmem:[%s704_s5] ss:$0 sm:$0xff] }
  0x8e   :  { %v74_v12 = vpop.xlane.xlu1 %73 }
  0x8f   :  { %v82_v13 = vmul.f32 %v78_v11, %v78_v11  ;;  %v80_v14 = vmul.f32 0.0625, %v74_v12  ;;  %v88_v26 = vsub.f32 %v61_v0, %v78_v11 }
  0x90   :  { %v69_v15 = vpop.xlane.xlu0 %68 }
  0x91   :  { %v84_v16 = vsub.f32 %v80_v14, %v82_v13  ;;  %v79_v17 = vmul.f32 0.0625, %v69_v15  ;;  %v487_v15 = vld [vmem:[%s705_s6] ss:$0 sm:$0xff] }
  0x92   :  { %v77_v18 = vpop.xlane.xlu1 %76 }
  0x93   :  { %v86_v19 = vmax.f32 %v84_v16, 0.0  ;;  %v83_v20 = vmul.f32 %v79_v17, %v79_v17  ;;  %v81_v21 = vmul.f32 0.0625, %v77_v18  ;;  %v89_v31 = vsub.f32 %v62_v1, %v79_v17 }
  0x95   :  { %v90_v22 = vadd.f32 1e-05, %v86_v19  ;;  %v85_v23 = vsub.f32 %v81_v21, %v83_v20  ;;  %v488_v19 = vld [vmem:[%s706_s8] ss:$0 sm:$0xff] }
  0x97   :  { %535 = vrsqrt.f32 %v90_v22  ;;  %v87_v24 = vmax.f32 %v85_v23, 0.0 }
  0x99   :  { %v91_v25 = vadd.f32 1e-05, %v87_v24 }
  0x9b   :  { %537 = vrsqrt.f32 %v91_v25 }
  0xa4   :  { %v536_v27 = vpop.eup %535 }
  0xa5   :  { %v94_v29 = vmul.f32 %v536_v27, %v88_v26 }
  0xa7   :  { %v102_v32 = vmul.f32 %v481_v28, %v94_v29 }
  0xa8   :  { %v538_v33 = vpop.eup %537 }
  0xa9   :  { %v95_v34 = vmul.f32 %v538_v33, %v89_v31  ;;  %v110_v35 = vadd.f32 %v482_v30, %v102_v32  ;;  %v59_v32 = vld [vmem:[%s707_s11 + $0x8] sm:$0xff]  ;;  %v58_v33 = vld [vmem:[%s707_s11] sm:$0xff] }
  0xaa   :  { %528 = vmatprep.subr.mxu0 %v59_v32 }
  0xab   :  { %v103_v36 = vmul.f32 %v481_v28, %v95_v34  ;;  %514 = vmatprep.mubr.msk.f32.mxu0 %vm63_vm0, %v110_v35 }
  0xad   :  { %v111_v37 = vadd.f32 %v482_v30, %v103_v36 }
  0xaf   :  { %515 = vmatmul.mubr.msk.f32.vlgmr.msra.gmra.mxu0 %vm63_vm0, %v111_v37 }
  0xb0   :  { %529 = vmatpush3.msra.mxu0 %v59_v32 }
  0xb1   :  { %530 = vmatprep.subr.mxu0 %v58_v33 }
  0xb2   :  { %531 = vmatpush3.msra.mxu0 %v58_v33 }
 0x16f   :  { %v516_v39 = vpop.f32.mrf.mxu0 }
 0x170   :  { %v196_v40 = vadd.f32 %v516_v39, %v483_v38 }
 0x171   :  { %v190_v41 = vpop.f32.mrf.mxu0 }
 0x172   :  { %v200_v42 = vmax.f32 %v196_v40, 0.0  ;;  %v191_v43 = vadd.f32 %v483_v38, %v190_v41 }
 0x174   :  { %v199_v44 = vmax.f32 %v191_v43, 0.0  ;;  %v205_v45 = vsel %vm201_vm1, %v200_v42, 0.0  ;;  %v209_v46 = vmul.f32 %v200_v42, %v200_v42 }
 0x175   :  { %206 = vadd.xlane.f32.xlu1 %v205_v45 }
 0x176   :  { %v202_v47 = vsel %vm201_vm1, %v199_v44, 0.0  ;;  %v208_v48 = vmul.f32 %v199_v44, %v199_v44  ;;  %v213_v49 = vsel %vm201_vm1, %v209_v46, 0.0 }
 0x177   :  { %203 = vadd.xlane.f32.xlu0 %v202_v47 }
 0x178   :  { %v210_v50 = vsel %vm201_vm1, %v208_v48, 0.0 }
 0x179   :  { %214 = vadd.xlane.f32.xlu1 %v213_v49 }
 0x17b   :  { %211 = vadd.xlane.f32.xlu0 %v210_v50 }
 0x1fe   :  { %v207_v55 = vpop.xlane.xlu1 %206 }
 0x1ff   :  { %v217_v56 = vmul.f32 0.03125, %v207_v55 }
 0x200   :  { %v204_v57 = vpop.xlane.xlu0 %203 }
 0x201   :  { %v216_v58 = vmul.f32 0.03125, %v204_v57  ;;  %v221_v60 = vmul.f32 %v217_v56, %v217_v56  ;;  %v227_v7 = vsub.f32 %v200_v42, %v217_v56 }
 0x202   :  { %v215_v59 = vpop.xlane.xlu1 %214 }
 0x203   :  { %v219_v61 = vmul.f32 0.03125, %v215_v59  ;;  %v220_v63 = vmul.f32 %v216_v58, %v216_v58  ;;  %v226_v9 = vsub.f32 %v199_v44, %v216_v58  ;;  %v492_v58 = vld [vmem:[%s709_s10] ss:$0 sm:$0xff] }
 0x204   :  { %v212_v62 = vpop.xlane.xlu0 %211 }
 0x205   :  { %v223_v0 = vsub.f32 %v219_v61, %v221_v60  ;;  %v218_v1 = vmul.f32 0.03125, %v212_v62  ;;  %v493_v62 = vld [vmem:[%s710_s12] ss:$0 sm:$0xff] }
 0x207   :  { %v225_v2 = vmax.f32 %v223_v0, 0.0  ;;  %v222_v3 = vsub.f32 %v218_v1, %v220_v63 }
 0x209   :  { %v229_v4 = vadd.f32 1e-05, %v225_v2  ;;  %v224_v5 = vmax.f32 %v222_v3, 0.0 }
 0x20b   :  { %539 = vrsqrt.f32 %v229_v4  ;;  %v228_v6 = vadd.f32 1e-05, %v224_v5 }
 0x20d   :  { %541 = vrsqrt.f32 %v228_v6 }
 0x218   :  { %v540_v8 = vpop.eup %539 }
 0x219   :  { %v233_v11 = vmul.f32 %v540_v8, %v227_v7 }
 0x21a   :  { %v542_v12 = vpop.eup %541 }
 0x21b   :  { %v232_v13 = vmul.f32 %v542_v12, %v226_v9  ;;  %v241_v14 = vmul.f32 %v486_v10, %v233_v11 }
 0x21d   :  { %v240_v16 = vmul.f32 %v486_v10, %v232_v13  ;;  %v249_v18 = vadd.f32 %v487_v15, %v241_v14 }
 0x21f   :  { %v248_v17 = vadd.f32 %v487_v15, %v240_v16 }
 0x221   :  { %525 = vmatprep.mubr.msk.f32.mxu1 %vm201_vm1, %v248_v17 }
 0x222   :  { %526 = vmatmul.mubr.msk.f32.vlgmr.msra.gmra.mxu1 %vm201_vm1, %v249_v18 }
 0x2e2   :  { %v527_v20 = vpop.f32.mrf.mxu1 }
 0x2e3   :  { %v334_v21 = vadd.f32 %v527_v20, %v488_v19 }
 0x2e4   :  { %v328_v22 = vpop.f32.mrf.mxu1 }
 0x2e5   :  { %v338_v23 = vmax.f32 %v334_v21, 0.0  ;;  %v329_v24 = vadd.f32 %v488_v19, %v328_v22 }
 0x2e7   :  { %v337_v25 = vmax.f32 %v329_v24, 0.0  ;;  %v342_v26 = vsel %vm63_vm0, %v338_v23, 0.0  ;;  %v346_v27 = vmul.f32 %v338_v23, %v338_v23 }
 0x2e8   :  { %343 = vadd.xlane.f32.xlu1 %v342_v26 }
 0x2e9   :  { %v339_v28 = vsel %vm63_vm0, %v337_v25, 0.0  ;;  %v345_v29 = vmul.f32 %v337_v25, %v337_v25  ;;  %v350_v30 = vsel %vm63_vm0, %v346_v27, 0.0 }
 0x2ea   :  { %340 = vadd.xlane.f32.xlu0 %v339_v28 }
 0x2eb   :  { %v347_v31 = vsel %vm63_vm0, %v345_v29, 0.0 }
 0x2ec   :  { %351 = vadd.xlane.f32.xlu1 %v350_v30 }
 0x2ee   :  { %348 = vadd.xlane.f32.xlu0 %v347_v31 }
 0x371   :  { %v344_v34 = vpop.xlane.xlu1 %343 }
 0x372   :  { %v354_v35 = vmul.f32 0.0625, %v344_v34 }
 0x373   :  { %v341_v36 = vpop.xlane.xlu0 %340 }
 0x374   :  { %v353_v37 = vmul.f32 0.0625, %v341_v36  ;;  %v358_v39 = vmul.f32 %v354_v35, %v354_v35  ;;  %v364_v50 = vsub.f32 %v338_v23, %v354_v35 }
 0x375   :  { %v352_v38 = vpop.xlane.xlu1 %351 }
 0x376   :  { %v356_v40 = vmul.f32 0.0625, %v352_v38  ;;  %v357_v42 = vmul.f32 %v353_v37, %v353_v37  ;;  %v363_v52 = vsub.f32 %v337_v25, %v353_v37 }
 0x377   :  { %v349_v41 = vpop.xlane.xlu0 %348 }
 0x378   :  { %v360_v43 = vsub.f32 %v356_v40, %v358_v39  ;;  %v355_v44 = vmul.f32 0.0625, %v349_v41 }
 0x37a   :  { %v362_v45 = vmax.f32 %v360_v43, 0.0  ;;  %v359_v46 = vsub.f32 %v355_v44, %v357_v42 }
 0x37c   :  { %v366_v47 = vadd.f32 1e-05, %v362_v45  ;;  %v361_v48 = vmax.f32 %v359_v46, 0.0 }
 0x37e   :  { %543 = vrsqrt.f32 %v366_v47  ;;  %v365_v49 = vadd.f32 1e-05, %v361_v48 }
 0x380   :  { %545 = vrsqrt.f32 %v365_v49 }
 0x38b   :  { %v544_v51 = vpop.eup %543 }
 0x38c   :  { %v370_v54 = vmul.f32 %v544_v51, %v364_v50 }
 0x38d   :  { %v546_v55 = vpop.eup %545 }
 0x38e   :  { %v369_v56 = vmul.f32 %v546_v55, %v363_v52  ;;  %v378_v57 = vmul.f32 %v491_v53, %v370_v54 }
 0x390   :  { %v377_v59 = vmul.f32 %v491_v53, %v369_v56  ;;  %v386_v61 = vadd.f32 %v492_v58, %v378_v57 }
 0x392   :  { %v385_v60 = vadd.f32 %v492_v58, %v377_v59 }
 0x394   :  { %532 = vmatprep.mubr.msk.f32.mxu0 %vm63_vm0, %v385_v60 }
 0x395   :  { %533 = vmatmul.mubr.msk.f32.vlgmr.msra.gmra.mxu0 %vm63_vm0, %v386_v61 }
 0x455   :  { %v534_v63 = vpop.f32.mrf.mxu0 }
 0x456   :  { %v471_v0 = vadd.f32 %v534_v63, %v493_v62 }
 0x457   :  { %v465_v1 = vpop.f32.mrf.mxu0 }
 0x458   :  { %476 = vst.msk [vmem:[%s711_s13 + $0x8] sm:$0xff] %vm474_vm2, %v471_v0  ;;  %v466_v2 = vadd.f32 %v493_v62, %v465_v1 }
 0x45a   :  { %475 = vst.msk [vmem:[%s711_s13] sm:$0xff] %vm474_vm2, %v466_v2 }

</bundles_post_ra>
